<compile_context>
chip_gen: v5e
topology: v5e:2x2
jax: 0.10.0
libtpu: 0.0.40
codegen_flags: <defaults>
</compile_context>

<pallas_src>
import functools

import jax
import jax.numpy as jnp
from jax.experimental import pallas as pl
from jax.experimental.pallas import tpu as pltpu


# ----------------------------------------------------------------------------
# Fused encoder + head kernel (grid = (n_batch_tiles, num_layers))
# ----------------------------------------------------------------------------

def _encoder_kernel(
    # inputs
    x_emb_ref,                    # [1, rows, H] bf16  (post embedding-LN)
    wqkv_ref,                     # [1, H, 3H]   bf16
    wo_ref,                       # [1, H, H]    bf16
    wi_ref,                       # [1, H, I]    bf16
    wo2_ref,                      # [1, I, H]    bf16
    bias_ref,                     # [1, 1, 3H+I] f32   (bq|bk|bv | bi)
    vec_ref,                      # [1, 6, H]    f32   (bo,ln1g,ln1b,bo2,ln2g,ln2b)
    pool_w_ref, pool_b_ref,       # [H, H] bf16, [1, H] f32
    mlp_w_ref, mlp_b_ref,         # [H, n_pad] bf16, [1, n_pad] f32
    # output
    logit_ref,                    # [1, Bt, n_pad] f32
    # scratch (persists across grid steps)
    x2_ref,                       # [rows, H] bf16 resident activations
    ctx_ref,                      # [rows, H] bf16 attention context
    *, Bt, S, H, nh, eps, ff_chunk, n_ff):
  f32 = jnp.float32
  bf16 = jnp.bfloat16
  dh = H // nh
  rows = Bt * S
  scale = 1.0 / (dh ** 0.5)

  def layernorm(x, g, b):          # x f32 [rows, H]; stats in f32
    mu = jnp.mean(x, axis=-1, keepdims=True)
    xc = x - mu
    var = jnp.mean(xc * xc, axis=-1, keepdims=True)
    return xc * jax.lax.rsqrt(var + eps) * g + b

  # --- first layer step of this batch tile: load resident activations ------
  @pl.when(pl.program_id(1) == 0)
  def _init():
    x2_ref[...] = x_emb_ref[0]

  # --- unpack the packed per-layer vectors (two DMAs cover all of them) ----
  bp = bias_ref[0]                                   # [1, 3H+I] f32
  bqkv = bp[:, :3 * H]                               # [1, 3H]
  bi = bp[:, 3 * H:]                                 # [1, I]
  vecs = vec_ref[0]                                  # [6, H] f32
  bo, ln1g, ln1b = vecs[0:1], vecs[1:2], vecs[2:3]
  bo2, ln2g, ln2b = vecs[3:4], vecs[4:5], vecs[5:6]

  x2 = x2_ref[...]                                   # [rows, H] bf16

  # --- fused Q|K|V projection; cast to bf16 ONCE after the bias add --------
  qkv = (jnp.dot(x2, wqkv_ref[0], preferred_element_type=f32)
         + bqkv).astype(bf16)                        # [rows, 3H] bf16

  # --- per-head attention core; context written into the bf16 ctx scratch --
  # TODO(synk): padding attention mask omitted (all tokens treated valid).
  # TODO(synk): dh-lane slices relayout on v6e/v7x; a head-major weight
  # layout would avoid it at the cost of a transpose elsewhere.
  for h in range(nh):
    qh = qkv[:, h * dh:(h + 1) * dh].reshape(Bt, S, dh)
    kh = qkv[:, H + h * dh:H + (h + 1) * dh].reshape(Bt, S, dh)
    vh = qkv[:, 2 * H + h * dh:2 * H + (h + 1) * dh].reshape(Bt, S, dh)

    s = jnp.einsum("bqd,bkd->bqk", qh, kh,
                   preferred_element_type=f32) * scale
    m = jnp.max(s, axis=-1, keepdims=True)
    p = jnp.exp(s - m)
    # exact reciprocal on the softmax normalization (correctness review).
    p = p * pl.reciprocal(jnp.sum(p, axis=-1, keepdims=True), approx=False)
    ctxh = jnp.einsum("bqk,bkd->bqd", p.astype(bf16), vh,
                      preferred_element_type=f32)    # [Bt, S, dh] f32
    ctx_ref[:, h * dh:(h + 1) * dh] = ctxh.reshape(rows, dh).astype(bf16)

  # --- ONE output projection (K = H, full MXU fill), residual + LN1 --------
  attn = jnp.dot(ctx_ref[...], wo_ref[0], preferred_element_type=f32) + bo
  x2_ref[...] = layernorm(x2.astype(f32) + attn, ln1g, ln1b).astype(bf16)

  # --- feed-forward, row-chunked so the f32 [chunk, I] slab is bounded -----
  wi = wi_ref[0]
  wo2 = wo2_ref[0]

  def ffn_rows(xc_bf):                               # [chunk, H] bf16 -> bf16
    inter = jnp.dot(xc_bf, wi, preferred_element_type=f32) + bi
    # TODO(synk): reference BERT may use exact erf GELU (approximate=False).
    inter = jax.nn.gelu(inter)
    ffn = jnp.dot(inter.astype(bf16), wo2, preferred_element_type=f32) + bo2
    return layernorm(xc_bf.astype(f32) + ffn, ln2g, ln2b).astype(bf16)

  if n_ff == 1:
    x2_ref[...] = ffn_rows(x2_ref[...])
  else:
    def _ff_body(c, carry):
      r0 = pl.multiple_of(c * ff_chunk, ff_chunk)
      x2_ref[pl.ds(r0, ff_chunk), :] = ffn_rows(x2_ref[pl.ds(r0, ff_chunk), :])
      return carry
    jax.lax.fori_loop(0, n_ff, _ff_body, 0)

  # --- last layer step: pooler + classifier head ----------------------------
  @pl.when(pl.program_id(1) == pl.num_programs(1) - 1)
  def _head():
    cls = x2_ref[...].reshape(Bt, S, H)[:, 0, :]     # [Bt, H] CLS tokens
    pooled = jnp.tanh(
        jnp.dot(cls, pool_w_ref[...], preferred_element_type=f32)
        + pool_b_ref[...])
    logit_ref[0] = (
        jnp.dot(pooled.astype(bf16), mlp_w_ref[...],
                preferred_element_type=f32) + mlp_b_ref[...])


# ----------------------------------------------------------------------------
# Wrapper: embedding glue + parameter packing + one pallas_call
# ----------------------------------------------------------------------------

def classifier_forward(params, sens, *, batch_tile=None):
  """Equivalent of Classifier.forward: returns (logit, None)."""
  B, S = sens.shape
  H = params["word_emb"].shape[1]
  nh = params["num_heads"]
  layers = params["layers"]
  L = len(layers)
  inter_dim = layers[0]["wi"].shape[1]
  n_intents = params["mlp_w"].shape[1]
  n_pad = -(-n_intents // 128) * 128                 # lane-dense head output

  bf16 = jnp.bfloat16
  f32 = jnp.float32

  kind = jax.devices()[0].device_kind.lower()
  two_core = "7" in kind                             # v7x: 2 TensorCores/chip
  vmem_limit = (52 if two_core else 104) * 1024 * 1024

  # Batch tiling: leading "parallel" grid axis (engages both TCs on v7x).
  if batch_tile is None:
    batch_tile = B // 2 if (two_core and B % 2 == 0) else B
  assert B % batch_tile == 0
  Bt = batch_tile
  n_bt = B // Bt
  rows = Bt * S

  # Embedding lookup + embedding LayerNorm: cheap JAX glue (gather).
  x_emb = (params["word_emb"][sens]
           + params["pos_emb"][:S][None, :, :]
           + params["type_emb"][0][None, None, :])   # [B, S, H] f32
  mu = jnp.mean(x_emb, axis=-1, keepdims=True)
  xc = x_emb - mu
  var = jnp.mean(xc * xc, axis=-1, keepdims=True)
  x_emb = (xc * jax.lax.rsqrt(var + 1e-12) * params["emb_ln_g"][0]
           + params["emb_ln_b"][0])
  x_emb = x_emb.reshape(n_bt, rows, H).astype(bf16)

  def stack(name, dtype=None):
    t = jnp.stack([lyr[name] for lyr in layers], axis=0)
    return t if dtype is None else t.astype(dtype)

  wqkv = jnp.stack(
      [jnp.concatenate([l["wq"], l["wk"], l["wv"]], axis=1) for l in layers],
      axis=0).astype(bf16)                           # [L, H, 3H]
  wo = stack("wo", bf16)                             # [L, H, H]
  wi = stack("wi", bf16)                             # [L, H, I]
  wo2 = stack("wo2", bf16)                           # [L, I, H]
  bias_pack = jnp.stack(
      [jnp.concatenate([l["bq"], l["bk"], l["bv"], l["bi"]], axis=1)
       for l in layers], axis=0)                     # [L, 1, 3H+I] f32
  vec_pack = jnp.stack(
      [jnp.concatenate([l["bo"], l["ln1_g"], l["ln1_b"],
                        l["bo2"], l["ln2_g"], l["ln2_b"]], axis=0)
       for l in layers], axis=0)                     # [L, 6, H] f32

  pool_w = params["pool_w"].astype(bf16)
  pool_b = params["pool_b"]
  mlp_w = jnp.zeros((H, n_pad), f32).at[:, :n_intents].set(
      params["mlp_w"]).astype(bf16)
  mlp_b = jnp.zeros((1, n_pad), f32).at[:, :n_intents].set(params["mlp_b"])

  # FFN row-chunking: bound the f32 [chunk, I] intermediate at large shapes.
  ff_chunk = rows
  if rows > 512:
    for c in (512, 256, 128, 64, 32, 16, 8):
      if rows % c == 0:
        ff_chunk = c
        break
  n_ff = rows // ff_chunk

  # BlockSpecs: per-layer tensors get one layer slice per grid step
  # (double-buffered weight streaming); the rest are constant blocks.
  def layer_spec(a):
    return pl.BlockSpec((1,) + a.shape[1:], lambda bt, l: (l, 0, 0))

  def const2_spec(a):
    return pl.BlockSpec(a.shape, lambda bt, l: (0, 0))

  kernel = functools.partial(
      _encoder_kernel, Bt=Bt, S=S, H=H, nh=nh, eps=1e-12,
      ff_chunk=ff_chunk, n_ff=n_ff)

  logit_pad = pl.pallas_call(
      kernel,
      out_shape=jax.ShapeDtypeStruct((n_bt, Bt, n_pad), f32),
      grid=(n_bt, L),
      in_specs=[
          pl.BlockSpec((1, rows, H), lambda bt, l: (bt, 0, 0)),   # x_emb
          layer_spec(wqkv), layer_spec(wo), layer_spec(wi), layer_spec(wo2),
          layer_spec(bias_pack), layer_spec(vec_pack),
          const2_spec(pool_w), const2_spec(pool_b),
          const2_spec(mlp_w), const2_spec(mlp_b),
      ],
      out_specs=pl.BlockSpec((1, Bt, n_pad), lambda bt, l: (bt, 0, 0)),
      scratch_shapes=[pltpu.VMEM((rows, H), bf16),    # resident activations
                      pltpu.VMEM((rows, H), bf16)],   # attention context
      compiler_params=pltpu.CompilerParams(
          dimension_semantics=("parallel", "arbitrary"),
          vmem_limit_bytes=vmem_limit),
  )(x_emb, wqkv, wo, wi, wo2, bias_pack, vec_pack,
    pool_w, pool_b, mlp_w, mlp_b)

  return logit_pad.reshape(B, n_pad)[:, :n_intents], None


# ----------------------------------------------------------------------------
# Deterministic parameter init (matches the PyTorch module's structure)
# ----------------------------------------------------------------------------

def init_params(key, *, vocab, max_pos, hidden, num_heads, num_layers,
                intermediate, num_intents):
  def nxt():
    nonlocal key
    key, sub = jax.random.split(key)
    return sub

  def dense(k_in, k_out):
    return (jax.random.normal(nxt(), (k_in, k_out), jnp.float32) * 0.02,
            jnp.zeros((1, k_out), jnp.float32))

  params = {
      "num_heads": num_heads,
      "word_emb": jax.random.normal(nxt(), (vocab, hidden), jnp.float32) * 0.02,
      "pos_emb": jax.random.normal(nxt(), (max_pos, hidden), jnp.float32) * 0.02,
      "type_emb": jax.random.normal(nxt(), (2, hidden), jnp.float32) * 0.02,
      "emb_ln_g": jnp.ones((1, hidden), jnp.float32),
      "emb_ln_b": jnp.zeros((1, hidden), jnp.float32),
      "layers": [],
  }
  for _ in range(num_layers):
    wq, bq = dense(hidden, hidden)
    wk, bk = dense(hidden, hidden)
    wv, bv = dense(hidden, hidden)
    wo, bo = dense(hidden, hidden)
    wi, bi = dense(hidden, intermediate)
    wo2, bo2 = dense(intermediate, hidden)
    params["layers"].append({
        "wq": wq, "bq": bq, "wk": wk, "bk": bk, "wv": wv, "bv": bv,
        "wo": wo, "bo": bo,
        "ln1_g": jnp.ones((1, hidden), jnp.float32),
        "ln1_b": jnp.zeros((1, hidden), jnp.float32),
        "wi": wi, "bi": bi, "wo2": wo2, "bo2": bo2,
        "ln2_g": jnp.ones((1, hidden), jnp.float32),
        "ln2_b": jnp.zeros((1, hidden), jnp.float32),
    })
  params["pool_w"], params["pool_b"] = dense(hidden, hidden)
  params["mlp_w"], params["mlp_b"] = dense(hidden, num_intents)
  return params


# ----------------------------------------------------------------------------

if __name__ == "__main__":
  B, S = 2, 8
  HIDDEN, HEADS, LAYERS, INTER = 32, 2, 2, 64
  VOCAB, MAX_POS, INTENTS = 32, 16, 5

  key = jax.random.PRNGKey(0)
  key, pkey, dkey = jax.random.split(key, 3)
  params = init_params(pkey, vocab=VOCAB, max_pos=MAX_POS, hidden=HIDDEN,
                       num_heads=HEADS, num_layers=LAYERS,
                       intermediate=INTER, num_intents=INTENTS)

  sens = jax.random.randint(dkey, (B, S), 0, VOCAB, dtype=jnp.int32)

  # batch_tile=1 deliberately exercises the multi-batch-tile ("parallel")
  # grid axis (n_bt=2) even on single-core TPU generations.
  logit, aux = classifier_forward(params, sens, batch_tile=1)
  logit = jax.block_until_ready(logit)

  assert logit.shape == (B, INTENTS), logit.shape
  assert aux is None
  assert bool(jnp.all(jnp.isfinite(logit)))
  print("KERNEL_OK")
</pallas_src>

<mosaic_0001>
module attributes {stable_mosaic.version = 11 : i64} {
  func.func @_encoder_kernel(%arg0: i32, %arg1: i32, %arg2: memref<1x8x32xbf16, #tpu.memory_space<vmem>>, %arg3: memref<1x32x96xbf16, #tpu.memory_space<vmem>>, %arg4: memref<1x32x32xbf16, #tpu.memory_space<vmem>>, %arg5: memref<1x32x64xbf16, #tpu.memory_space<vmem>>, %arg6: memref<1x64x32xbf16, #tpu.memory_space<vmem>>, %arg7: memref<1x1x160xf32, #tpu.memory_space<vmem>>, %arg8: memref<1x6x32xf32, #tpu.memory_space<vmem>>, %arg9: memref<32x32xbf16, #tpu.memory_space<vmem>>, %arg10: memref<1x32xf32, #tpu.memory_space<vmem>>, %arg11: memref<32x128xbf16, #tpu.memory_space<vmem>>, %arg12: memref<1x128xf32, #tpu.memory_space<vmem>>, %arg13: memref<1x1x128xf32, #tpu.memory_space<vmem>>, %arg14: memref<8x32xbf16, #tpu.memory_space<vmem>>, %arg15: memref<8x32xbf16, #tpu.memory_space<vmem>>) attributes {dimension_semantics = [#tpu.dimension_semantics<parallel>, #tpu.dimension_semantics<arbitrary>], iteration_bounds = array<i64: 2, 2>, scalar_prefetch = 0 : i64, scratch_operands = 2 : i64, tpu.core_type = #tpu.core_type<tc>, window_params = [{transform_indices = @transform_0, window_bounds = array<i64: 1, 8, 32>}, {transform_indices = @transform_1, window_bounds = array<i64: 1, 32, 96>}, {transform_indices = @transform_2, window_bounds = array<i64: 1, 32, 32>}, {transform_indices = @transform_3, window_bounds = array<i64: 1, 32, 64>}, {transform_indices = @transform_4, window_bounds = array<i64: 1, 64, 32>}, {transform_indices = @transform_5, window_bounds = array<i64: 1, 1, 160>}, {transform_indices = @transform_6, window_bounds = array<i64: 1, 6, 32>}, {pipeline_mode = #tpu.pipeline_mode<synchronous>, transform_indices = @transform_7, window_bounds = array<i64: 32, 32>}, {pipeline_mode = #tpu.pipeline_mode<synchronous>, transform_indices = @transform_8, window_bounds = array<i64: 1, 32>}, {pipeline_mode = #tpu.pipeline_mode<synchronous>, transform_indices = @transform_9, window_bounds = array<i64: 32, 128>}, {pipeline_mode = #tpu.pipeline_mode<synchronous>, transform_indices = @transform_10, window_bounds = array<i64: 1, 128>}, {transform_indices = @transform_11, window_bounds = array<i64: 1, 1, 128>}]} {
    %c0_i32 = arith.constant 0 : i32
    %0 = arith.cmpi eq, %arg1, %c0_i32 : i32
    %1 = arith.extui %0 : i1 to i32
    %c0_i32_0 = arith.constant 0 : i32
    %2 = arith.cmpi ne, %1, %c0_i32_0 : i32
    scf.if %2 {
      %c0_59 = arith.constant 0 : index
      %c0_60 = arith.constant 0 : index
      %c0_61 = arith.constant 0 : index
      %152 = vector.load %arg2[%c0_59, %c0_60, %c0_61] : memref<1x8x32xbf16, #tpu.memory_space<vmem>>, vector<1x8x32xbf16>
      %153 = vector.shape_cast %152 : vector<1x8x32xbf16> to vector<8x32xbf16>
      %c0_62 = arith.constant 0 : index
      %c0_63 = arith.constant 0 : index
      %154 = vector.load %arg14[%c0_62, %c0_63] : memref<8x32xbf16, #tpu.memory_space<vmem>>, vector<8x32xbf16>
      tpu.vector_store %arg14[%c0_62, %c0_63], %153 {strides = array<i32>} : memref<8x32xbf16, #tpu.memory_space<vmem>>, vector<8x32xbf16>,
    } else {
    }
    %c0 = arith.constant 0 : index
    %c0_1 = arith.constant 0 : index
    %c0_2 = arith.constant 0 : index
    %3 = vector.load %arg7[%c0, %c0_1, %c0_2] : memref<1x1x160xf32, #tpu.memory_space<vmem>>, vector<1x1x160xf32>
    %4 = vector.shape_cast %3 : vector<1x1x160xf32> to vector<1x160xf32>
    %5 = vector.extract_strided_slice %4 {offsets = [0, 0], sizes = [1, 96], strides = [1, 1]} : vector<1x160xf32> to vector<1x96xf32>
    %6 = vector.extract_strided_slice %4 {offsets = [0, 96], sizes = [1, 64], strides = [1, 1]} : vector<1x160xf32> to vector<1x64xf32>
    %c0_3 = arith.constant 0 : index
    %c0_4 = arith.constant 0 : index
    %c0_5 = arith.constant 0 : index
    %7 = vector.load %arg8[%c0_3, %c0_4, %c0_5] : memref<1x6x32xf32, #tpu.memory_space<vmem>>, vector<1x6x32xf32>
    %8 = vector.shape_cast %7 : vector<1x6x32xf32> to vector<6x32xf32>
    %9 = vector.extract_strided_slice %8 {offsets = [0, 0], sizes = [1, 32], strides = [1, 1]} : vector<6x32xf32> to vector<1x32xf32>
    %10 = vector.extract_strided_slice %8 {offsets = [1, 0], sizes = [1, 32], strides = [1, 1]} : vector<6x32xf32> to vector<1x32xf32>
    %11 = vector.extract_strided_slice %8 {offsets = [2, 0], sizes = [1, 32], strides = [1, 1]} : vector<6x32xf32> to vector<1x32xf32>
    %12 = vector.extract_strided_slice %8 {offsets = [3, 0], sizes = [1, 32], strides = [1, 1]} : vector<6x32xf32> to vector<1x32xf32>
    %13 = vector.extract_strided_slice %8 {offsets = [4, 0], sizes = [1, 32], strides = [1, 1]} : vector<6x32xf32> to vector<1x32xf32>
    %14 = vector.extract_strided_slice %8 {offsets = [5, 0], sizes = [1, 32], strides = [1, 1]} : vector<6x32xf32> to vector<1x32xf32>
    %c0_6 = arith.constant 0 : index
    %c0_7 = arith.constant 0 : index
    %15 = vector.load %arg14[%c0_6, %c0_7] : memref<8x32xbf16, #tpu.memory_space<vmem>>, vector<8x32xbf16>
    %c0_8 = arith.constant 0 : index
    %c0_9 = arith.constant 0 : index
    %c0_10 = arith.constant 0 : index
    %16 = vector.load %arg3[%c0_8, %c0_9, %c0_10] : memref<1x32x96xbf16, #tpu.memory_space<vmem>>, vector<1x32x96xbf16>
    %17 = vector.shape_cast %16 : vector<1x32x96xbf16> to vector<32x96xbf16>
    %cst = arith.constant dense<0.000000e+00> : vector<8x96xf32>
    %18 = tpu.matmul %15, %17, %cst {dimension_numbers = #tpu.dot_dimension_numbers<[1], [0], [0], [1], [0, 0, 1, 1], [], []>} : vector<8x32xbf16>, vector<32x96xbf16>, vector<8x96xf32> -> vector<8x96xf32>
    %19 = vector.broadcast %5 : vector<1x96xf32> to vector<8x96xf32>
    %20 = arith.addf %18, %19 : vector<8x96xf32>
    %21 = arith.truncf %20 : vector<8x96xf32> to vector<8x96xbf16>
    %22 = vector.extract_strided_slice %21 {offsets = [0, 0], sizes = [8, 16], strides = [1, 1]} : vector<8x96xbf16> to vector<8x16xbf16>
    %23 = vector.shape_cast %22 : vector<8x16xbf16> to vector<1x8x16xbf16>
    %24 = vector.extract_strided_slice %21 {offsets = [0, 32], sizes = [8, 16], strides = [1, 1]} : vector<8x96xbf16> to vector<8x16xbf16>
    %25 = vector.shape_cast %24 : vector<8x16xbf16> to vector<1x8x16xbf16>
    %26 = vector.extract_strided_slice %21 {offsets = [0, 64], sizes = [8, 16], strides = [1, 1]} : vector<8x96xbf16> to vector<8x16xbf16>
    %27 = vector.shape_cast %26 : vector<8x16xbf16> to vector<1x8x16xbf16>
    "tpu.trace_start"() <{level = 10 : i32, message = "bqd,bkd->bqk"}> : () -> ()
    %cst_11 = arith.constant dense<0.000000e+00> : vector<1x8x8xf32>
    %28 = tpu.matmul %23, %25, %cst_11 {dimension_numbers = #tpu.dot_dimension_numbers<[2], [2], [1], [1], [0, 0, 0, 1, 1, 1], [0], [0]>} : vector<1x8x16xbf16>, vector<1x8x16xbf16>, vector<1x8x8xf32> -> vector<1x8x8xf32>
    "tpu.trace_stop"() : () -> ()
    %cst_12 = arith.constant 2.500000e-01 : f32
    %29 = vector.broadcast %cst_12 : f32 to vector<1x8x8xf32>
    %30 = arith.mulf %28, %29 : vector<1x8x8xf32>
    %cst_13 = arith.constant dense<0xFF800000> : vector<1x8xf32>
    %31 = vector.multi_reduction <maximumf>, %30, %cst_13 [2] : vector<1x8x8xf32> to vector<1x8xf32>
    %32 = vector.shape_cast %31 : vector<1x8xf32> to vector<1x8x1xf32>
    %33 = vector.broadcast %32 : vector<1x8x1xf32> to vector<1x8x8xf32>
    %34 = arith.subf %30, %33 : vector<1x8x8xf32>
    %35 = math.exp %34 : vector<1x8x8xf32>
    %cst_14 = arith.constant dense<0.000000e+00> : vector<1x8xf32>
    %36 = vector.multi_reduction <add>, %35, %cst_14 [2] : vector<1x8x8xf32> to vector<1x8xf32>
    %37 = vector.shape_cast %36 : vector<1x8xf32> to vector<1x8x1xf32>
    %38 = tpu.reciprocal %37 : vector<1x8x1xf32> -> vector<1x8x1xf32>
    %39 = vector.broadcast %38 : vector<1x8x1xf32> to vector<1x8x8xf32>
    %40 = arith.mulf %35, %39 : vector<1x8x8xf32>
    %41 = arith.truncf %40 : vector<1x8x8xf32> to vector<1x8x8xbf16>
    "tpu.trace_start"() <{level = 10 : i32, message = "bqk,bkd->bqd"}> : () -> ()
    %cst_15 = arith.constant dense<0.000000e+00> : vector<1x8x16xf32>
    %42 = tpu.matmul %41, %27, %cst_15 {dimension_numbers = #tpu.dot_dimension_numbers<[2], [1], [1], [2], [0, 0, 0, 1, 1, 2], [0], [0]>} : vector<1x8x8xbf16>, vector<1x8x16xbf16>, vector<1x8x16xf32> -> vector<1x8x16xf32>
    "tpu.trace_stop"() : () -> ()
    %43 = vector.shape_cast %42 : vector<1x8x16xf32> to vector<8x16xf32>
    %44 = arith.truncf %43 : vector<8x16xf32> to vector<8x16xbf16>
    %c0_16 = arith.constant 0 : index
    %c0_17 = arith.constant 0 : index
    %45 = vector.load %arg15[%c0_16, %c0_17] : memref<8x32xbf16, #tpu.memory_space<vmem>>, vector<8x16xbf16>
    tpu.vector_store %arg15[%c0_16, %c0_17], %44 {strides = array<i32>} : memref<8x32xbf16, #tpu.memory_space<vmem>>, vector<8x16xbf16>,
    %46 = vector.extract_strided_slice %21 {offsets = [0, 16], sizes = [8, 16], strides = [1, 1]} : vector<8x96xbf16> to vector<8x16xbf16>
    %47 = vector.shape_cast %46 : vector<8x16xbf16> to vector<1x8x16xbf16>
    %48 = vector.extract_strided_slice %21 {offsets = [0, 48], sizes = [8, 16], strides = [1, 1]} : vector<8x96xbf16> to vector<8x16xbf16>
    %49 = vector.shape_cast %48 : vector<8x16xbf16> to vector<1x8x16xbf16>
    %50 = vector.extract_strided_slice %21 {offsets = [0, 80], sizes = [8, 16], strides = [1, 1]} : vector<8x96xbf16> to vector<8x16xbf16>
    %51 = vector.shape_cast %50 : vector<8x16xbf16> to vector<1x8x16xbf16>
    "tpu.trace_start"() <{level = 10 : i32, message = "bqd,bkd->bqk"}> : () -> ()
    %cst_18 = arith.constant dense<0.000000e+00> : vector<1x8x8xf32>
    %52 = tpu.matmul %47, %49, %cst_18 {dimension_numbers = #tpu.dot_dimension_numbers<[2], [2], [1], [1], [0, 0, 0, 1, 1, 1], [0], [0]>} : vector<1x8x16xbf16>, vector<1x8x16xbf16>, vector<1x8x8xf32> -> vector<1x8x8xf32>
    "tpu.trace_stop"() : () -> ()
    %cst_19 = arith.constant 2.500000e-01 : f32
    %53 = vector.broadcast %cst_19 : f32 to vector<1x8x8xf32>
    %54 = arith.mulf %52, %53 : vector<1x8x8xf32>
    %cst_20 = arith.constant dense<0xFF800000> : vector<1x8xf32>
    %55 = vector.multi_reduction <maximumf>, %54, %cst_20 [2] : vector<1x8x8xf32> to vector<1x8xf32>
    %56 = vector.shape_cast %55 : vector<1x8xf32> to vector<1x8x1xf32>
    %57 = vector.broadcast %56 : vector<1x8x1xf32> to vector<1x8x8xf32>
    %58 = arith.subf %54, %57 : vector<1x8x8xf32>
    %59 = math.exp %58 : vector<1x8x8xf32>
    %cst_21 = arith.constant dense<0.000000e+00> : vector<1x8xf32>
    %60 = vector.multi_reduction <add>, %59, %cst_21 [2] : vector<1x8x8xf32> to vector<1x8xf32>
    %61 = vector.shape_cast %60 : vector<1x8xf32> to vector<1x8x1xf32>
    %62 = tpu.reciprocal %61 : vector<1x8x1xf32> -> vector<1x8x1xf32>
    %63 = vector.broadcast %62 : vector<1x8x1xf32> to vector<1x8x8xf32>
    %64 = arith.mulf %59, %63 : vector<1x8x8xf32>
    %65 = arith.truncf %64 : vector<1x8x8xf32> to vector<1x8x8xbf16>
    "tpu.trace_start"() <{level = 10 : i32, message = "bqk,bkd->bqd"}> : () -> ()
    %cst_22 = arith.constant dense<0.000000e+00> : vector<1x8x16xf32>
    %66 = tpu.matmul %65, %51, %cst_22 {dimension_numbers = #tpu.dot_dimension_numbers<[2], [1], [1], [2], [0, 0, 0, 1, 1, 2], [0], [0]>} : vector<1x8x8xbf16>, vector<1x8x16xbf16>, vector<1x8x16xf32> -> vector<1x8x16xf32>
    "tpu.trace_stop"() : () -> ()
    %67 = vector.shape_cast %66 : vector<1x8x16xf32> to vector<8x16xf32>
    %68 = arith.truncf %67 : vector<8x16xf32> to vector<8x16xbf16>
    %c0_23 = arith.constant 0 : index
    %c16 = arith.constant 16 : index
    %69 = vector.load %arg15[%c0_23, %c16] : memref<8x32xbf16, #tpu.memory_space<vmem>>, vector<8x16xbf16>
    tpu.vector_store %arg15[%c0_23, %c16], %68 {strides = array<i32>} : memref<8x32xbf16, #tpu.memory_space<vmem>>, vector<8x16xbf16>,
    %c0_24 = arith.constant 0 : index
    %c0_25 = arith.constant 0 : index
    %70 = vector.load %arg15[%c0_24, %c0_25] : memref<8x32xbf16, #tpu.memory_space<vmem>>, vector<8x32xbf16>
    %c0_26 = arith.constant 0 : index
    %c0_27 = arith.constant 0 : index
    %c0_28 = arith.constant 0 : index
    %71 = vector.load %arg4[%c0_26, %c0_27, %c0_28] : memref<1x32x32xbf16, #tpu.memory_space<vmem>>, vector<1x32x32xbf16>
    %72 = vector.shape_cast %71 : vector<1x32x32xbf16> to vector<32x32xbf16>
    %cst_29 = arith.constant dense<0.000000e+00> : vector<8x32xf32>
    %73 = tpu.matmul %70, %72, %cst_29 {dimension_numbers = #tpu.dot_dimension_numbers<[1], [0], [0], [1], [0, 0, 1, 1], [], []>} : vector<8x32xbf16>, vector<32x32xbf16>, vector<8x32xf32> -> vector<8x32xf32>
    %74 = vector.broadcast %9 : vector<1x32xf32> to vector<8x32xf32>
    %75 = arith.addf %73, %74 : vector<8x32xf32>
    %76 = arith.extf %15 : vector<8x32xbf16> to vector<8x32xf32>
    %77 = arith.addf %76, %75 : vector<8x32xf32>
    %cst_30 = arith.constant dense<0.000000e+00> : vector<8xf32>
    %78 = vector.multi_reduction <add>, %77, %cst_30 [1] : vector<8x32xf32> to vector<8xf32>
    %79 = vector.shape_cast %78 : vector<8xf32> to vector<8x1xf32>
    %cst_31 = arith.constant 3.200000e+01 : f32
    %80 = vector.broadcast %cst_31 : f32 to vector<8x1xf32>
    %81 = arith.divf %79, %80 : vector<8x1xf32>
    %82 = vector.broadcast %81 : vector<8x1xf32> to vector<8x32xf32>
    %83 = arith.subf %77, %82 : vector<8x32xf32>
    %84 = arith.mulf %83, %83 : vector<8x32xf32>
    %cst_32 = arith.constant dense<0.000000e+00> : vector<8xf32>
    %85 = vector.multi_reduction <add>, %84, %cst_32 [1] : vector<8x32xf32> to vector<8xf32>
    %86 = vector.shape_cast %85 : vector<8xf32> to vector<8x1xf32>
    %cst_33 = arith.constant 3.200000e+01 : f32
    %87 = vector.broadcast %cst_33 : f32 to vector<8x1xf32>
    %88 = arith.divf %86, %87 : vector<8x1xf32>
    %cst_34 = arith.constant 9.99999996E-13 : f32
    %89 = vector.broadcast %cst_34 : f32 to vector<8x1xf32>
    %90 = arith.addf %88, %89 : vector<8x1xf32>
    %91 = math.rsqrt %90 : vector<8x1xf32>
    %92 = vector.broadcast %91 : vector<8x1xf32> to vector<8x32xf32>
    %93 = arith.mulf %83, %92 : vector<8x32xf32>
    %94 = vector.broadcast %10 : vector<1x32xf32> to vector<8x32xf32>
    %95 = arith.mulf %93, %94 : vector<8x32xf32>
    %96 = vector.broadcast %11 : vector<1x32xf32> to vector<8x32xf32>
    %97 = arith.addf %95, %96 : vector<8x32xf32>
    %98 = arith.truncf %97 : vector<8x32xf32> to vector<8x32xbf16>
    %c0_35 = arith.constant 0 : index
    %c0_36 = arith.constant 0 : index
    %99 = vector.load %arg14[%c0_35, %c0_36] : memref<8x32xbf16, #tpu.memory_space<vmem>>, vector<8x32xbf16>
    tpu.vector_store %arg14[%c0_35, %c0_36], %98 {strides = array<i32>} : memref<8x32xbf16, #tpu.memory_space<vmem>>, vector<8x32xbf16>,
    %c0_37 = arith.constant 0 : index
    %c0_38 = arith.constant 0 : index
    %c0_39 = arith.constant 0 : index
    %100 = vector.load %arg5[%c0_37, %c0_38, %c0_39] : memref<1x32x64xbf16, #tpu.memory_space<vmem>>, vector<1x32x64xbf16>
    %101 = vector.shape_cast %100 : vector<1x32x64xbf16> to vector<32x64xbf16>
    %c0_40 = arith.constant 0 : index
    %c0_41 = arith.constant 0 : index
    %c0_42 = arith.constant 0 : index
    %102 = vector.load %arg6[%c0_40, %c0_41, %c0_42] : memref<1x64x32xbf16, #tpu.memory_space<vmem>>, vector<1x64x32xbf16>
    %103 = vector.shape_cast %102 : vector<1x64x32xbf16> to vector<64x32xbf16>
    %c0_43 = arith.constant 0 : index
    %c0_44 = arith.constant 0 : index
    %104 = vector.load %arg14[%c0_43, %c0_44] : memref<8x32xbf16, #tpu.memory_space<vmem>>, vector<8x32xbf16>
    %cst_45 = arith.constant dense<0.000000e+00> : vector<8x64xf32>
    %105 = tpu.matmul %104, %101, %cst_45 {dimension_numbers = #tpu.dot_dimension_numbers<[1], [0], [0], [1], [0, 0, 1, 1], [], []>} : vector<8x32xbf16>, vector<32x64xbf16>, vector<8x64xf32> -> vector<8x64xf32>
    %106 = vector.broadcast %6 : vector<1x64xf32> to vector<8x64xf32>
    %107 = arith.addf %105, %106 : vector<8x64xf32>
    %108 = arith.mulf %107, %107 : vector<8x64xf32>
    %109 = arith.mulf %107, %108 : vector<8x64xf32>
    %cst_46 = arith.constant 4.471500e-02 : f32
    %110 = vector.broadcast %cst_46 : f32 to vector<8x64xf32>
    %111 = arith.mulf %110, %109 : vector<8x64xf32>
    %112 = arith.addf %107, %111 : vector<8x64xf32>
    %cst_47 = arith.constant 0.797884583 : f32
    %113 = vector.broadcast %cst_47 : f32 to vector<8x64xf32>
    %114 = arith.mulf %113, %112 : vector<8x64xf32>
    %115 = math.tanh %114 : vector<8x64xf32>
    %cst_48 = arith.constant 1.000000e+00 : f32
    %116 = vector.broadcast %cst_48 : f32 to vector<8x64xf32>
    %117 = arith.addf %116, %115 : vector<8x64xf32>
    %cst_49 = arith.constant 5.000000e-01 : f32
    %118 = vector.broadcast %cst_49 : f32 to vector<8x64xf32>
    %119 = arith.mulf %118, %117 : vector<8x64xf32>
    %120 = arith.mulf %107, %119 : vector<8x64xf32>
    %121 = arith.truncf %120 : vector<8x64xf32> to vector<8x64xbf16>
    %cst_50 = arith.constant dense<0.000000e+00> : vector<8x32xf32>
    %122 = tpu.matmul %121, %103, %cst_50 {dimension_numbers = #tpu.dot_dimension_numbers<[1], [0], [0], [1], [0, 0, 1, 1], [], []>} : vector<8x64xbf16>, vector<64x32xbf16>, vector<8x32xf32> -> vector<8x32xf32>
    %123 = vector.broadcast %12 : vector<1x32xf32> to vector<8x32xf32>
    %124 = arith.addf %122, %123 : vector<8x32xf32>
    %125 = arith.extf %104 : vector<8x32xbf16> to vector<8x32xf32>
    %126 = arith.addf %125, %124 : vector<8x32xf32>
    %cst_51 = arith.constant dense<0.000000e+00> : vector<8xf32>
    %127 = vector.multi_reduction <add>, %126, %cst_51 [1] : vector<8x32xf32> to vector<8xf32>
    %128 = vector.shape_cast %127 : vector<8xf32> to vector<8x1xf32>
    %cst_52 = arith.constant 3.200000e+01 : f32
    %129 = vector.broadcast %cst_52 : f32 to vector<8x1xf32>
    %130 = arith.divf %128, %129 : vector<8x1xf32>
    %131 = vector.broadcast %130 : vector<8x1xf32> to vector<8x32xf32>
    %132 = arith.subf %126, %131 : vector<8x32xf32>
    %133 = arith.mulf %132, %132 : vector<8x32xf32>
    %cst_53 = arith.constant dense<0.000000e+00> : vector<8xf32>
    %134 = vector.multi_reduction <add>, %133, %cst_53 [1] : vector<8x32xf32> to vector<8xf32>
    %135 = vector.shape_cast %134 : vector<8xf32> to vector<8x1xf32>
    %cst_54 = arith.constant 3.200000e+01 : f32
    %136 = vector.broadcast %cst_54 : f32 to vector<8x1xf32>
    %137 = arith.divf %135, %136 : vector<8x1xf32>
    %cst_55 = arith.constant 9.99999996E-13 : f32
    %138 = vector.broadcast %cst_55 : f32 to vector<8x1xf32>
    %139 = arith.addf %137, %138 : vector<8x1xf32>
    %140 = math.rsqrt %139 : vector<8x1xf32>
    %141 = vector.broadcast %140 : vector<8x1xf32> to vector<8x32xf32>
    %142 = arith.mulf %132, %141 : vector<8x32xf32>
    %143 = vector.broadcast %13 : vector<1x32xf32> to vector<8x32xf32>
    %144 = arith.mulf %142, %143 : vector<8x32xf32>
    %145 = vector.broadcast %14 : vector<1x32xf32> to vector<8x32xf32>
    %146 = arith.addf %144, %145 : vector<8x32xf32>
    %147 = arith.truncf %146 : vector<8x32xf32> to vector<8x32xbf16>
    %c0_56 = arith.constant 0 : index
    %c0_57 = arith.constant 0 : index
    %148 = vector.load %arg14[%c0_56, %c0_57] : memref<8x32xbf16, #tpu.memory_space<vmem>>, vector<8x32xbf16>
    tpu.vector_store %arg14[%c0_56, %c0_57], %147 {strides = array<i32>} : memref<8x32xbf16, #tpu.memory_space<vmem>>, vector<8x32xbf16>,
    %c1_i32 = arith.constant 1 : i32
    %149 = arith.cmpi eq, %arg1, %c1_i32 : i32
    %150 = arith.extui %149 : i1 to i32
    %c0_i32_58 = arith.constant 0 : i32
    %151 = arith.cmpi ne, %150, %c0_i32_58 : i32
    scf.if %151 {
      %c0_59 = arith.constant 0 : index
      %c0_60 = arith.constant 0 : index
      %152 = vector.load %arg14[%c0_59, %c0_60] : memref<8x32xbf16, #tpu.memory_space<vmem>>, vector<8x32xbf16>
      %153 = vector.shape_cast %152 : vector<8x32xbf16> to vector<1x8x32xbf16>
      %154 = vector.extract_strided_slice %153 {offsets = [0, 0, 0], sizes = [1, 1, 32], strides = [1, 1, 1]} : vector<1x8x32xbf16> to vector<1x1x32xbf16>
      %155 = vector.shape_cast %154 : vector<1x1x32xbf16> to vector<1x32xbf16>
      %c0_61 = arith.constant 0 : index
      %c0_62 = arith.constant 0 : index
      %156 = vector.load %arg9[%c0_61, %c0_62] : memref<32x32xbf16, #tpu.memory_space<vmem>>, vector<32x32xbf16>
      %cst_63 = arith.constant dense<0.000000e+00> : vector<1x32xf32>
      %157 = tpu.matmul %155, %156, %cst_63 {dimension_numbers = #tpu.dot_dimension_numbers<[1], [0], [0], [1], [0, 0, 1, 1], [], []>} : vector<1x32xbf16>, vector<32x32xbf16>, vector<1x32xf32> -> vector<1x32xf32>
      %c0_64 = arith.constant 0 : index
      %c0_65 = arith.constant 0 : index
      %158 = vector.load %arg10[%c0_64, %c0_65] : memref<1x32xf32, #tpu.memory_space<vmem>>, vector<1x32xf32>
      %159 = arith.addf %157, %158 : vector<1x32xf32>
      %160 = math.tanh %159 : vector<1x32xf32>
      %161 = arith.truncf %160 : vector<1x32xf32> to vector<1x32xbf16>
      %c0_66 = arith.constant 0 : index
      %c0_67 = arith.constant 0 : index
      %162 = vector.load %arg11[%c0_66, %c0_67] : memref<32x128xbf16, #tpu.memory_space<vmem>>, vector<32x128xbf16>
      %cst_68 = arith.constant dense<0.000000e+00> : vector<1x128xf32>
      %163 = tpu.matmul %161, %162, %cst_68 {dimension_numbers = #tpu.dot_dimension_numbers<[1], [0], [0], [1], [0, 0, 1, 1], [], []>} : vector<1x32xbf16>, vector<32x128xbf16>, vector<1x128xf32> -> vector<1x128xf32>
      %c0_69 = arith.constant 0 : index
      %c0_70 = arith.constant 0 : index
      %164 = vector.load %arg12[%c0_69, %c0_70] : memref<1x128xf32, #tpu.memory_space<vmem>>, vector<1x128xf32>
      %165 = arith.addf %163, %164 : vector<1x128xf32>
      %c0_71 = arith.constant 0 : index
      %c0_72 = arith.constant 0 : index
      %c0_73 = arith.constant 0 : index
      %166 = vector.load %arg13[%c0_71, %c0_72, %c0_73] : memref<1x1x128xf32, #tpu.memory_space<vmem>>, vector<1x1x128xf32>
      %167 = vector.shape_cast %166 : vector<1x1x128xf32> to vector<1x128xf32>
      %168 = vector.shape_cast %165 : vector<1x128xf32> to vector<1x1x128xf32>
      tpu.vector_store %arg13[%c0_71, %c0_72, %c0_73], %168 {strides = array<i32>} : memref<1x1x128xf32, #tpu.memory_space<vmem>>, vector<1x1x128xf32>,
    } else {
    }
    return
  }
  func.func @transform_0(%arg0: i32, %arg1: i32) -> (i32, i32, i32) {
    %c0_i32 = arith.constant 0 : i32
    %c0_i32_0 = arith.constant 0 : i32
    %c0_i32_1 = arith.constant 0 : i32
    return %arg0, %c0_i32, %c0_i32_0 : i32, i32, i32
  }
  func.func @transform_1(%arg0: i32, %arg1: i32) -> (i32, i32, i32) {
    %c0_i32 = arith.constant 0 : i32
    %c0_i32_0 = arith.constant 0 : i32
    %c0_i32_1 = arith.constant 0 : i32
    return %arg1, %c0_i32, %c0_i32_0 : i32, i32, i32
  }
  func.func @transform_2(%arg0: i32, %arg1: i32) -> (i32, i32, i32) {
    %c0_i32 = arith.constant 0 : i32
    %c0_i32_0 = arith.constant 0 : i32
    %c0_i32_1 = arith.constant 0 : i32
    return %arg1, %c0_i32, %c0_i32_0 : i32, i32, i32
  }
  func.func @transform_3(%arg0: i32, %arg1: i32) -> (i32, i32, i32) {
    %c0_i32 = arith.constant 0 : i32
    %c0_i32_0 = arith.constant 0 : i32
    %c0_i32_1 = arith.constant 0 : i32
    return %arg1, %c0_i32, %c0_i32_0 : i32, i32, i32
  }
  func.func @transform_4(%arg0: i32, %arg1: i32) -> (i32, i32, i32) {
    %c0_i32 = arith.constant 0 : i32
    %c0_i32_0 = arith.constant 0 : i32
    %c0_i32_1 = arith.constant 0 : i32
    return %arg1, %c0_i32, %c0_i32_0 : i32, i32, i32
  }
  func.func @transform_5(%arg0: i32, %arg1: i32) -> (i32, i32, i32) {
    %c0_i32 = arith.constant 0 : i32
    %c0_i32_0 = arith.constant 0 : i32
    %c0_i32_1 = arith.constant 0 : i32
    return %arg1, %c0_i32, %c0_i32_0 : i32, i32, i32
  }
  func.func @transform_6(%arg0: i32, %arg1: i32) -> (i32, i32, i32) {
    %c0_i32 = arith.constant 0 : i32
    %c0_i32_0 = arith.constant 0 : i32
    %c0_i32_1 = arith.constant 0 : i32
    return %arg1, %c0_i32, %c0_i32_0 : i32, i32, i32
  }
  func.func @transform_7(%arg0: i32, %arg1: i32) -> (i32, i32) {
    %c0_i32 = arith.constant 0 : i32
    %c0_i32_0 = arith.constant 0 : i32
    %c0_i32_1 = arith.constant 0 : i32
    return %c0_i32, %c0_i32_0 : i32, i32
  }
  func.func @transform_8(%arg0: i32, %arg1: i32) -> (i32, i32) {
    %c0_i32 = arith.constant 0 : i32
    %c0_i32_0 = arith.constant 0 : i32
    %c0_i32_1 = arith.constant 0 : i32
    return %c0_i32, %c0_i32_0 : i32, i32
  }
  func.func @transform_9(%arg0: i32, %arg1: i32) -> (i32, i32) {
    %c0_i32 = arith.constant 0 : i32
    %c0_i32_0 = arith.constant 0 : i32
    %c0_i32_1 = arith.constant 0 : i32
    return %c0_i32, %c0_i32_0 : i32, i32
  }
  func.func @transform_10(%arg0: i32, %arg1: i32) -> (i32, i32) {
    %c0_i32 = arith.constant 0 : i32
    %c0_i32_0 = arith.constant 0 : i32
    %c0_i32_1 = arith.constant 0 : i32
    return %c0_i32, %c0_i32_0 : i32, i32
  }
  func.func @transform_11(%arg0: i32, %arg1: i32) -> (i32, i32, i32) {
    %c0_i32 = arith.constant 0 : i32
    %c0_i32_0 = arith.constant 0 : i32
    %c0_i32_1 = arith.constant 0 : i32
    return %arg0, %c0_i32, %c0_i32_0 : i32, i32, i32
  }
}

</mosaic_0001>

<bundles_post_ra>
// kernel: tpu_custom_call.1
= control target key start
LH: loop header
LB: loop body
LE: loop exit
PB: predicated region body
PF: predicated region fallthrough
CT: control target
= control target key end

     0   :  { %s2025_s0 = inlined_call_operand.hbm [shape: bf16[2,8,32], index: 0, kind: input, shape index: {}]   ;;  %s2026_s1 = inlined_call_operand.vmem [shape: bf16[2,32,96], index: 1, kind: input, shape index: {}]   ;;  %s2027_s2 = inlined_call_operand.vmem [shape: bf16[2,32,32], index: 2, kind: input, shape index: {}]   ;;  %s2028_s3 = inlined_call_operand.vmem [shape: bf16[2,32,64], index: 3, kind: input, shape index: {}]   ;;  %s2029_s4 = inlined_call_operand.vmem [shape: bf16[2,64,32], index: 4, kind: input, shape index: {}]   ;;  %s2030_s5 = inlined_call_operand.hbm [shape: f32[2,1,160], index: 5, kind: input, shape index: {}]   ;;  %s2031_s6 = inlined_call_operand.vmem [shape: f32[2,6,32], index: 6, kind: input, shape index: {}]   ;;  %s2032_s7 = inlined_call_operand.vmem [shape: bf16[32,32], index: 7, kind: input, shape index: {}]   ;;  %s2033_s8 = inlined_call_operand.vmem [shape: f32[1,32], index: 8, kind: input, shape index: {}]   ;;  %s2034_s9 = inlined_call_operand.vmem [shape: bf16[32,128], index: 9, kind: input, shape index: {}]   ;;  %s2035_s10 = inlined_call_operand.vmem [shape: f32[1,128], index: 10, kind: input, shape index: {}]   ;;  %s2036_s11 = inlined_call_operand.hbm [shape: f32[2,1,128], index: 11, kind: output, shape index: {}]  }
   0x1   :  { %2049 = sst [smem:[#allocation23_spill]] %s2025_s0 }
   0x2   :  { %2050 = sst [smem:[#allocation24_spill]] %s2026_s1 }
   0x3   :  { %2051 = sst [smem:[#allocation25_spill]] %s2029_s4 }
   0x4   :  { %2052 = sst [smem:[#allocation26_spill]] %s2030_s5 }
   0x5   :  { %2053 = sst [smem:[#allocation27_spill]] %s2031_s6 }
   0x6   :  { %2054 = sst [smem:[#allocation28_spill]] %s2032_s7 }
   0x7   :  { %2055 = sst [smem:[#allocation29_spill]] %s2033_s8 }
   0x8   :  { %2056 = sst [smem:[#allocation30_spill]] %s2034_s9 }
   0x9   :  { %2057 = sst [smem:[#allocation31_spill]] %s2035_s10 }
   0xa   :  { %2058 = sst [smem:[#allocation32_spill]] %s2036_s11 }
   0xb   :  { %16 = vsyncpa [#allocation5], 0 }
   0xc   :  { %18 = vsyncpa [#allocation5 + $0x1], 0 }
   0xd   :  { %19 = vsyncpa [#allocation8], 0 }
   0xe   :  { %21 = vsyncpa [#allocation8 + $0x1], 0 }
   0xf   :  { %22 = vsyncpa [#allocation6], 0 }
  0x10   :  { %24 = vsyncpa [#allocation6 + $0x1], 0  ;;  %s1699_s17 = smov 0   ;;  %s1701_s18 = smov 0  }
  0x11   :  { %s1703_s19 = smov 0   ;;  %s1705_s20 = smov 0  }
  0x12   :  { %s1707_s21 = smov 0   ;;  %s1709_s22 = smov 0  }
  0x13   :  { %s1711_s23 = smov 0   ;;  %s1713_s24 = smov 0  }
  0x14   :  { %s1715_s25 = smov 0   ;;  %s1717_s26 = smov 0  }
  0x15   :  { %s1719_s27 = smov 0  }
  0x16 LB: > { %2059 = sst [smem:[#allocation13_spill]] %s1601_s20  ;;  %s1202_s28 = sadd.s32 4294967295, %s1629_s27   ;;  %s1629_s27 = sphi %s1719_s27, %s30_s27   ;;  %s1625_s26 = sphi %s1717_s26, %s2098_s26   ;;  %s1621_s25 = sphi %s1715_s25, %s2097_s25   ;;  %s1617_s24 = sphi %s1713_s24, %s2096_s24   ;;  %s1613_s23 = sphi %s1711_s23, %s2095_s23   ;;  %s1609_s22 = sphi %s1709_s22, %s2094_s22   ;;  %s1605_s21 = sphi %s1707_s21, %s2103_s21   ;;  %s1601_s20 = sphi %s1705_s20, %s2102_s20   ;;  %s1597_s19 = sphi %s1703_s19, %s2101_s19   ;;  %s1593_s18 = sphi %s1701_s18, %s2100_s18   ;;  %s1589_s17 = sphi %s1699_s17, %s2099_s17  }
  0x17   : > { %2060 = sst [smem:[#allocation14_spill]] %s1609_s22  ;;  %s1203_s29 = sadd.s32 4294967294, %s1629_s27  }
  0x18   : > { %2061 = sst [smem:[#allocation15_spill]] %s1617_s24  ;;  %p56_p0 = scmp.ne.s32.totalorder %s1609_s22, %s1605_s21 }
  0x19   : > { %2062 = sst [smem:[#allocation16_spill]] %s1621_s25  ;;  %p57_p1 = scmp.eq.s32.totalorder %s1629_s27, 0 }
  0x1a   : > { %2063 = sst [smem:[#allocation17_spill]] %s1625_s26  ;;  %p62_p2 = scmp.ne.s32.totalorder %s1605_s21, %s1601_s20 }
  0x1b   : > { %p1763_p3 = scmp.eq.s32.totalorder %s1202_s28, 0  ;;  %p1769_p4 = por %p57_p1, %p56_p0 }
  0x1c   : > { %p326_p5 = scmp.eq.s32.totalorder %s1202_s28, 3  ;;  %p332_p7 = scmp.eq.s32.totalorder %s1203_s29, 3 }
  0x1d   : > { %p1775_p6 = por %p1763_p3, %p62_p2  ;;  %p1327_p10 = scmp.lt.s32.totalorder %s1629_s27, 4 }
  0x1e   : > { %p1779_p8 = por %p326_p5, %p56_p0  ;;  %p1783_p9 = por %p332_p7, %p62_p2 }
  0x1f   : > { %s364_s30 = sand.u32 1, %s1609_s22   ;;  %s1207_s28 = sshll.u32 %s1625_s26, 2 }
  0x20   : > { %s2067_s16 = scalar_select %p1779_p8, 1, 0 }
  0x21   : > { %s2069_s12 = scalar_select %p1783_p9, 1, 0 }
  0x22   : > { %2068 = sst [smem:[#allocation18_spill]] %s2067_s16  ;;  %s1206_s20 = sshll.u32 %s364_s30, 2 }
  0x23   : > { %2070 = sst [smem:[#allocation19_spill]] %s2069_s12  ;;  %s368_s16 = scalar_lea.vmem [#allocation4], %s1206_s20 }
  0x24   : > { %s2071_s0 = sld [smem:[#allocation23_spill]]  ;;  %s376_s8 = sshll.u32 %s368_s16, 4  ;;  %s377_s8 = int_to_ptr.vmem [resolvable:$true] %s376_s8 }
  0x25   : > { %p1317_p11 = pnand %p1327_p10, %p1769_p4  ;;  %p1210_p12 = scmp.ge.s32.totalorder %s1629_s27, 1 }
  0x26   : > { %p439_p13 = scmp.lt.s32.totalorder %s1629_s27, 5  ;;  %s365_s11 = scalar_lea.sflag [#allocation5], %s364_s30 }
  0x27   : > { %s39_s20 = sadd.s32 1, %s1621_s25  ;;  %s179_s16 = sadd.s32 1, %s1597_s19 }
  0x28   : > { %p1799_p0 = pnand %p1210_p12, %p439_p13  ;;  %p40_p2 = scmp.ge.s32.totalorder %s39_s20, 2 }
  0x29   : > { %p186_p5 = scmp.ne.s32.totalorder %s1597_s19, %s1593_s18  ;;  %p192_p4 = scmp.ne.s32.totalorder %s1593_s18, %s1589_s17 }
  0x2a   : > { %s372_s29 = scalar_lea.hbm %s2071_s0, %s1207_s28  ;;  %s2105_s20 = smov (%p40_p2, %s39_s20), 0 }
  0x2b   : > { %s374_s10 = sshll.u32 %s372_s29, 4  ;;  %2073 = sst [smem:[#allocation20_spill]] %s2105_s20  ;;  %s375_s10 = int_to_ptr.hbm [resolvable:$true] %s374_s10 }
  0x2c   : > { %1319 = dma.hbm_to_vmem [thread:$0]  (!%p1317_p11), %s375_s10, 64, %s377_s8, %s365_s11  }
  0x2d   : > { %s2074_s14 = sadd.s32 1, %s1625_s26  ;;  %s176_s8 = ssub.s32 %s1621_s25, %s2105_s20 }
  0x2e   : > { %s2107_s14 = smov (!%p40_p2, %s2074_s14), %s1625_s26  ;;  %p1818_p7 = por %p186_p5, %p57_p1 }
  0x2f   : > { %p44_p11 = scmp.ge.s32.totalorder %s2107_s14, 2  ;;  %p177_p12 = scmp.eq.s32.totalorder %s176_s8, 0 }
  0x30   : > { %p1824_p13 = por %p192_p4, %p1763_p3  ;;  %s415_s17 = sand.u32 1, %s1597_s19  }
  0x31   : > { %s2109_s14 = smov (%p44_p11, %s2107_s14), 0  ;;  %s1208_s11 = sshll.u32 %s415_s17, 1 }
  0x32   : > { %2077 = sst [smem:[#allocation21_spill]] %s2109_s14  ;;  %s46_s29 = ssub.s32 %s1625_s26, %s2109_s14 }
  0x33   : > { %s1832_s28 = scalar_select %p177_p12, %s1597_s19, %s179_s16  }
  0x34   : > { %p47_p1 = scmp.eq.s32.totalorder %s46_s29, 0  ;;  %s1209_s0 = sshll.u32 %s1621_s25, 1 }
  0x35   : > { %s2078_s20 = sadd.s32 1, %s1609_s22  ;;  %s2080_s5 = sld [smem:[#allocation26_spill]] }
  0x36   : > { %s1840_s12 = scalar_select %p47_p1, %s1609_s22, %s2078_s20  }
  0x37   : > { %s419_s7 = scalar_lea.vmem [#allocation7], %s1208_s11  ;;  %p1320_p3 = pnand %p1327_p10, %p1818_p7 }
  0x38   : > { %2079 = sst [smem:[#allocation22_spill]] %s1840_s12  ;;  %s427_s6 = sshll.u32 %s419_s7, 4  ;;  %s428_s6 = int_to_ptr.vmem [resolvable:$true] %s427_s6 }
  0x39   : > { %s416_s16 = scalar_lea.sflag [#allocation8], %s415_s17  ;;  %443 = sbr.rel (%p1799_p0) target bundleno = 2259 (0x8d3), region = 64 }
  0x3a   : > { %s1852_s20 = sand.u32 (!%p1799_p0), 1, %s1605_s21  }
  0x3b   : > { %s423_s9 = scalar_lea.hbm %s2080_s5, %s1209_s0  ;;  %s1211_s0 = sshll.u32 (!%p1799_p0), %s1852_s20, 2 }
  0x3c   : > { %s425_s4 = sshll.u32 %s423_s9, 4  ;;  %s446_s29 = scalar_lea.sflag (!%p1799_p0), [#allocation5], %s1852_s20  ;;  %s426_s4 = int_to_ptr.hbm [resolvable:$true] %s425_s4 }
  0x3d   : > { %1322 = dma.hbm_to_vmem [thread:$0]  (!%p1320_p3), %s426_s4, 32, %s428_s6, %s416_s16  }
  0x3e   : > { %s449_s7 = scalar_lea.vmem [#allocation4], %s1211_s0 }
  0x3f   : > { %1576 = dma.done.wait (%p1775_p6), %s446_s29, 64  }
  0x40   : > { %1578 = vsyncadd (%p1775_p6), %s446_s29, 4294967232  ;;  %s455_s4 = sand.u32 1, %s1593_s18  }
  0x41   : > { %s1861_s6 = sshll.u32 %s455_s4, 1  ;;  %s456_s9 = scalar_lea.sflag [#allocation8], %s455_s4 }
  0x42   : > { %s459_s24 = scalar_lea.vmem [#allocation7], %s1861_s6 }
  0x43   : > { %1580 = dma.done.wait (%p1824_p13), %s456_s9, 32  }
  0x44   : > { %1582 = vsyncadd (%p1824_p13), %s456_s9, 4294967264  ;;  %p527_p10 = scmp.lt.s32.totalorder %s1613_s23, 1  ;;  %s2081_s1 = sld [smem:[#allocation24_spill]] }
  0x45   : > { %s2082_s14 = sld [smem:[#allocation25_spill]]  ;;  %p1222_p6 = scmp.ne.s32.totalorder %s1613_s23, 0 }
  0x46   : > { %s528_s10 = scalar_select %p527_p10, %s1613_s23, 1 }
  0x47   : > { %s2083_s11 = sld [smem:[#allocation27_spill]] }
  0x48   : > { %s1292_s15 = sshll.u32 %s528_s10, 4  ;;  %s1295_s17 = sshll.u32 %s528_s10, 5 }
  0x49   : > { %s1876_s29 = scalar_lea.vmem %s2027_s2, %s1292_s15  ;;  %s1881_s30 = scalar_lea.vmem %s2028_s3, %s1292_s15 }
  0x4a   : > { %s531_s8 = scalar_lea.vmem %s2081_s1, %s1292_s15  ;;  %s1221_s25 = sshll.u32 %s528_s10, 3 }
  0x4b   : > { %s1886_s26 = scalar_lea.vmem %s2082_s14, %s1295_s17  ;;  %s526_s1 = scalar_lea.vmem [#allocation9], %s1852_s20 }
  0x4c   : > { %555 = sbr.rel (%p1222_p6) target bundleno = 83 (0x53), region = 76 }
  0x4d   : > { %s1891_s13 = scalar_lea.vmem %s2083_s11, %s1221_s25 }
  0x51   : > { %v556_v0 = vld [vmem:[%s449_s7] sm:$0xf]  ;;  %vm557_vm0 = vcmask 257024  }
  0x52   : > { %558 = vst.msk [vmem:[#allocation2] sm:$0xf] %vm557_vm0, %v556_v0 }
  0x53 PF: > { %v1297_v1 = vld [vmem:[%s531_s8 + $0x8] sm:$0xff]  ;;  %v1296_v2 = vld [vmem:[%s531_s8] sm:$0xff]  ;;  %vm581_vm1 = vcmask 261120   ;;  %v1899_v4 = vld [vmem:[%s459_s24] sm:$0x3]  ;;  %s1631_s5 = smov 112  }
  0x54   : > { %591 = vmatpush.bf16.msra.mxu0 %v1297_v1  ;;  %v567_v5 = vperm.slane %v1899_v4, 0  ;;  %s1632_s22 = smov 96   ;;  %s1633_s25 = smov 80   ;;  %vm604_vm2 = vcmask 130048   ;;  %vm625_vm3 = vcmask 64512   ;;  %vm656_vm4 = vcmask 1043456  }
  0x55   : > { %s1634_s12 = smov 64   ;;  %s1635_s14 = smov 48   ;;  %v1299_v1 = vld [vmem:[%s1876_s29 + $0x8] sm:$0xff]  ;;  %vm674_vm13 = vcmask 125952   ;;  %vm751_vm14 = vcmask 257152  }
  0x56   : > { %s1636_s7 = smov 16   ;;  %s1638_s24 = smov 32  }
  0x57   : > { %p1271_p0 = scmp.ne.s32.totalorder %s1613_s23, 1 }
  0x58   : > { %592 = vmatpush.bf16.msra.mxu0 %v1296_v2  ;;  %s2084_s15 = sld [smem:[#allocation28_spill]] (!%p1271_p0) }
  0x59   : > { %v1895_v3 = vld [vmem:[#allocation2] sm:$0xf]  ;;  %s2086_s9 = sld [smem:[#allocation29_spill]] (!%p1271_p0) }
  0x5b   : > { %1231 = vmatmul.msk.bf16.vlgmr.msra.gmra.mxu0 %vm581_vm1, %v1895_v3 }
  0x5c   : > { %780 = vmatpush.bf16.msrb.mxu0 %v1299_v1 }
  0xd8   : > { %v594_v6 = vpop.f32.mrf.mxu0 }
  0xd9   : > { %v595_v7 = vadd.f32 %v594_v6, %v567_v5 }
  0xdb   : > { %v598_v8 = vpack.c.bf16 %v595_v7, %v595_v7 }
  0xdd   : > { %v600_v9 = vunpack.c.l.b16 %v598_v8 }
  0xdf   : > { %v601_v10 = vpack.c.b16 %v600_v9, %v600_v9 }
  0xe0   : > { %v596_v11 = vpop.f32.mrf.mxu0 }
  0xe1   : > { %676 = vrot.lane.b32.xlu1 %v601_v10, %s1631_s5  ;;  %602 = vrot.lane.b32.xlu0 %v601_v10, %s1632_s22  ;;  %v1298_v11 = vld [vmem:[%s1876_s29] sm:$0xff]  ;;  %s2085_s29 = sld [smem:[#allocation30_spill]] (!%p1271_p0) }
  0xe2   : > { %781 = vmatpush.bf16.msrb.mxu0 %v1298_v11  ;;  %s2087_s5 = sld [smem:[#allocation31_spill]] (!%p1271_p0) }
  0xe9   : > { %678 = vrot.lane.b32.xlu0 %v601_v10, %s1633_s25 }
 0x153   : > { %v603_v12 = vpop.permute.xlu0 %602  ;;  %v677_v16 = vpop.permute.xlu1 %676 }
 0x154   : > { %v609_v13 = vsel %vm604_vm2, %v603_v12, 0 }
 0x155   : > { %618 = vmatpush.bf16.xpose.msra.mxu1 %v609_v13 }
 0x15b   : > { %v679_v14 = vpop.permute.xlu0 %678 }
 0x15c   : > { %1232 = vmatmul.msk.bf16.vlgmr.msra.gmra.mxu1 %vm604_vm2, %v598_v8  ;;  %v684_v15 = vsel %vm604_vm2, %v679_v14, 0  ;;  %v1916_v14 = vld [vmem:[%s1891_s13] sm:$0x3f] }
 0x15d   : > { %693 = vmatpush.bf16.xpose.msra.mxu3 %v684_v15  ;;  %v758_v15 = vperm.slane %v1916_v14, 0 }
 0x164   : > { %1234 = vmatmul.msk.bf16.vlgmr.msra.gmra.mxu3 %vm604_vm2, %v677_v16  ;;  %v787_v16 = vunpack.c.l.bf16 %v1895_v3 }
 0x1d9   : > { %v620_v17 = vpop.f32.mrf.mxu1 }
 0x1da   : > { %v624_v18 = vmul.f32 0.25, %v620_v17 }
 0x1dc   : > { %v626_v19 = vsel %vm625_vm3, %v624_v18, -inf }
 0x1dd   : > { %627 = vmax.xlane.f32.xlu1 %v626_v19 }
 0x1e1   : > { %v622_v20 = vpop.f32.mrf.mxu1 }
 0x1e7   : > { %v695_v21 = vpop.f32.mrf.mxu3 }
 0x1e8   : > { %v699_v22 = vmul.f32 0.25, %v695_v21 }
 0x1ea   : > { %v700_v23 = vsel %vm625_vm3, %v699_v22, -inf }
 0x1eb   : > { %701 = vmax.xlane.f32.xlu2 %v700_v23 }
 0x1ef   : > { %v697_v24 = vpop.f32.mrf.mxu3 }
 0x250   : > { %v628_v25 = vpop.xlane.xlu1 %627 }
 0x251   : > { %v629_v26 = vsub.f32 %v624_v18, %v628_v25 }
 0x253   : > { %v630_v27 = vmul.f32 1.442695, %v629_v26 }
 0x255   : > { %1425 = vpow2.f32 %v630_v27 }
 0x25b   : > { %v1426_v28 = vpop.eup %1425 }
 0x25c   : > { %v632_v29 = vsel %vm625_vm3, %v1426_v28, 0.0 }
 0x25d   : > { %633 = vadd.xlane.f32.xlu2 %v632_v29 }
 0x25e   : > { %v702_v30 = vpop.xlane.xlu2 %701 }
 0x25f   : > { %v703_v31 = vsub.f32 %v699_v22, %v702_v30  ;;  %v1637_v22 = vmov 32.0  }
 0x261   : > { %v704_v32 = vmul.f32 1.442695, %v703_v31 }
 0x263   : > { %1427 = vpow2.f32 %v704_v32 }
 0x269   : > { %v1428_v33 = vpop.eup %1427 }
 0x26a   : > { %v706_v34 = vsel %vm625_vm3, %v1428_v33, 0.0 }
 0x26b   : > { %707 = vadd.xlane.f32.xlu0 %v706_v34 }
 0x275   : > { %651 = vrot.lane.b32.xlu2 %v601_v10, %s1634_s12 }
 0x27d   : > { %725 = vrot.lane.b32.xlu2 %v601_v10, %s1635_s14 }
 0x27f   : > { %851 = vrot.lane.b32.xlu0 %v567_v5, %s1638_s24 }
 0x2d0   : > { %v634_v35 = vpop.xlane.xlu2 %633 }
 0x2d1   : > { %1429 = vrcp.f32 %v634_v35  ;;  %v646_v41 = vand.u32 2147483648, %v634_v35  ;;  %v644_v43 = vand.u32 2147483647, %v634_v35  ;;  %vm640_vm6 = vweird.f32 %v634_v35 }
 0x2d3   : > { %v647_v46 = vor.u32 1.1754944e-38, %v646_v41  ;;  %vm645_vm8 = vcmp.eq.f32.partialorder %v644_v43, 8.507059e+37 }
 0x2d7   : > { %v1430_v36 = vpop.eup %1429 }
 0x2d8   : > { %v636_v37 = vmul.f32 %v1430_v36, %v634_v35  ;;  %v652_v38 = vpop.permute.xlu2 %651  ;;  %vm641_vm5 = vweird.f32 %v1430_v36  ;;  %v1300_v35 = vld [vmem:[%s1881_s30] sm:$0xff] }
 0x2d9   : > { %v658_v39 = vsel %vm656_vm4, %v652_v38, 0  ;;  %vm642_vm7 = vmor %vm640_vm6, %vm641_vm5  ;;  %v838_v38 = vperm.slane %v1899_v4, 1  ;;  %vm908_vm5 = vcmask 523264  }
 0x2da   : > { %v637_v40 = vsub.f32 1.0, %v636_v37  ;;  %667 = vmatpush.bf16.msra.mxu2 %v658_v39 }
 0x2dc   : > { %v638_v42 = vmul.f32 %v1430_v36, %v637_v40 }
 0x2de   : > { %v708_v44 = vpop.xlane.xlu0 %707  ;;  %v639_v45 = vadd.f32 %v1430_v36, %v638_v42 }
 0x2df   : > { %1431 = vrcp.f32 %v708_v44  ;;  %v720_v56 = vand.u32 2147483648, %v708_v44  ;;  %v718_v58 = vand.u32 2147483647, %v708_v44  ;;  %vm714_vm10 = vweird.f32 %v708_v44 }
 0x2e0   : > { %v726_v47 = vpop.permute.xlu2 %725  ;;  %v643_v48 = vsel %vm642_vm7, %v1430_v36, %v639_v45  ;;  %1433 = vrcp.f32 %v1637_v22 }
 0x2e1   : > { %v731_v49 = vsel %vm656_vm4, %v726_v47, 0  ;;  %v648_v50 = vsel %vm645_vm8, %v647_v46, %v643_v48  ;;  %v721_v60 = vor.u32 1.1754944e-38, %v720_v56  ;;  %vm719_vm12 = vcmp.eq.f32.partialorder %v718_v58, 8.507059e+37 }
 0x2e2   : > { %740 = vmatpush.bf16.msrb.mxu2 %v731_v49  ;;  %v649_v51 = vmul.f32 %v1426_v28, %v648_v50  ;;  %v820_v46 = vperm.slane %v1916_v14, 2  ;;  %vm823_vm4 = vcmask 257024  }
 0x2e4   : > { %v650_v52 = vpack.c.bf16 %v649_v51, %v649_v51  ;;  %v1305_v51 = vld [vmem:[%s1886_s26 + $0x18] sm:$0xff] }
 0x2e5   : > { %v1432_v53 = vpop.eup %1431  ;;  %916 = vmatpush.bf16.msrb.mxu3 %v1305_v51 }
 0x2e6   : > { %v710_v54 = vmul.f32 %v1432_v53, %v708_v44  ;;  %1233 = vmatmul.msk.bf16.vlgmr.msra.gmra.mxu2 %vm625_vm3, %v650_v52  ;;  %vm715_vm9 = vweird.f32 %v1432_v53  ;;  %v1434_v23 = vpop.eup %1433  ;;  %v818_v44 = vperm.slane %v1916_v14, 1  ;;  %v1304_v52 = vld [vmem:[%s1886_s26 + $0x10] sm:$0xff] }
 0x2e7   : > { %vm716_vm11 = vmor %vm714_vm10, %vm715_vm9  ;;  %v793_v24 = vmul.f32 32.0, %v1434_v23  ;;  %vm797_vm15 = vweird.f32 %v1434_v23 }
 0x2e8   : > { %v711_v55 = vsub.f32 1.0, %v710_v54  ;;  %v1302_v54 = vld [vmem:[%s1886_s26] sm:$0xff] }
 0x2e9   : > { %v794_v25 = vsub.f32 1.0, %v793_v24  ;;  %917 = vmatpush.bf16.msrb.mxu3 %v1304_v52 }
 0x2ea   : > { %v712_v57 = vmul.f32 %v1432_v53, %v711_v55 }
 0x2eb   : > { %v795_v26 = vmul.f32 %v1434_v23, %v794_v25 }
 0x2ec   : > { %v713_v59 = vadd.f32 %v1432_v53, %v712_v57 }
 0x2ed   : > { %v796_v27 = vadd.f32 %v1434_v23, %v795_v26 }
 0x2ee   : > { %v717_v61 = vsel %vm716_vm11, %v1432_v53, %v713_v59  ;;  %v1303_v53 = vld [vmem:[%s1886_s26 + $0x8] sm:$0xff] }
 0x2ef   : > { %v722_v62 = vsel %vm719_vm12, %v721_v60, %v717_v61  ;;  %v1921_v28 = vsel %vm797_vm15, %v1434_v23, %v796_v27  ;;  %918 = vmatpush.bf16.msrb.mxu3 %v1303_v53 }
 0x2f0   : > { %v723_v63 = vmul.f32 %v1428_v33, %v722_v62  ;;  %v1301_v33 = vld [vmem:[%s1881_s30 + $0x8] sm:$0xff] }
 0x2f1   : > { %866 = vmatpush.bf16.msrb.mxu1 %v1301_v33  ;;  %v852_v55 = vpop.permute.xlu0 %851 }
 0x2f2   : > { %v724_v0 = vpack.c.bf16 %v723_v63, %v723_v63 }
 0x2f3   : > { %919 = vmatpush.bf16.msrb.mxu3 %v1302_v54 }
 0x2f5   : > { %867 = vmatpush.bf16.msrb.mxu1 %v1300_v35 }
 0x2f6   : > { %1235 = vmatmul.msk.bf16.vlgmr.msrb.gmra.mxu2 %vm625_vm3, %v724_v0 }
 0x369   : > { %v669_v2 = vpop.f32.mrf.mxu2 }
 0x36a   : > { %v673_v6 = vpack.c.bf16 %v669_v2, %v669_v2 }
 0x36c   : > { %675 = vst.msk [vmem:[#allocation3] sm:$0xf] %vm674_vm13, %v673_v6 }
 0x371   : > { %v671_v7 = vpop.f32.mrf.mxu2 }
 0x379   : > { %v742_v8 = vpop.f32.mrf.mxu2 }
 0x37a   : > { %v746_v9 = vpack.c.bf16 %v742_v8, %v742_v8 }
 0x37c   : > { %748 = vrot.lane.b32.xlu2 %v746_v9, %s1636_s7 }
 0x381   : > { %v744_v10 = vpop.f32.mrf.mxu2 }
 0x382   : > { %v883_v10 = vperm.slane %v1916_v14, 3 }
 0x3d6   : > { %v749_v12 = vpop.permute.xlu2 %748 }
 0x3d7   : > { %752 = vst.msk [vmem:[#allocation3] sm:$0xf] %vm751_vm14, %v749_v12 }
 0x3de   : > { %v753_v13 = vld [vmem:[#allocation3] sm:$0xf] }
 0x3df   : > { %1244 = vmatmul.msk.bf16.vlgmr.msrb.gmra.mxu0 %vm581_vm1, %v753_v13 }
 0x45c   : > { %v783_v17 = vpop.f32.mrf.mxu0 }
 0x45d   : > { %v784_v18 = vadd.f32 %v783_v17, %v758_v15 }
 0x45f   : > { %v788_v19 = vadd.f32 %v787_v16, %v784_v18 }
 0x461   : > { %v789_v20 = vsel %vm581_vm1, %v788_v19, 0.0 }
 0x462   : > { %790 = vadd.xlane.f32.xlu1 %v789_v20 }
 0x464   : > { %v785_v21 = vpop.f32.mrf.mxu0 }
 0x47b   : > { %853 = vrot.lane.b32.xlu1 %v838_v38, %s1638_s24 }
 0x4d5   : > { %v791_v3 = vpop.xlane.xlu1 %790 }
 0x4d6   : > { %v799_v29 = vmul.f32 %v1921_v28, %v791_v3 }
 0x4d8   : > { %v800_v30 = vsub.f32 %v788_v19, %v799_v29 }
 0x4da   : > { %v801_v31 = vmul.f32 %v800_v30, %v800_v30 }
 0x4dc   : > { %v802_v32 = vsel %vm581_vm1, %v801_v31, 0.0 }
 0x4dd   : > { %803 = vadd.xlane.f32.xlu2 %v802_v32  ;;  %v949_v32 = vperm.slane %v1916_v14, 4 }
 0x4ed   : > { %v854_v56 = vpop.permute.xlu1 %853 }
 0x4ee   : > { %v855_v57 = vsel %vm581_vm1, %v852_v55, %v854_v56 }
 0x550   : > { %v804_v34 = vpop.xlane.xlu2 %803 }
 0x551   : > { %v805_v36 = vmul.f32 %v804_v34, %v1921_v28  ;;  %v951_v34 = vperm.slane %v1916_v14, 5 }
 0x553   : > { %v806_v37 = vadd.f32 1e-12, %v805_v36 }
 0x555   : > { %1435 = vrsqrt.f32 %v806_v37  ;;  %vm813_vm2 = vweird.f32 %v806_v37 }
 0x55b   : > { %v1436_v39 = vpop.eup %1435 }
 0x55c   : > { %v808_v40 = vmul.f32 %v1436_v39, %v806_v37  ;;  %vm814_vm0 = vweird.f32 %v1436_v39 }
 0x55d   : > { %vm815_vm3 = vmor %vm813_vm2, %vm814_vm0 }
 0x55e   : > { %v809_v41 = vmul.f32 %v1436_v39, %v808_v40 }
 0x560   : > { %v810_v42 = vmul.f32 0.5, %v809_v41 }
 0x562   : > { %v811_v43 = vsub.f32 1.5, %v810_v42 }
 0x564   : > { %v812_v5 = vmul.f32 %v1436_v39, %v811_v43 }
 0x566   : > { %v816_v45 = vsel %vm815_vm3, %v1436_v39, %v812_v5 }
 0x567   : > { %v817_v4 = vmul.f32 %v816_v45, %v800_v30 }
 0x569   : > { %v819_v47 = vmul.f32 %v818_v44, %v817_v4 }
 0x56b   : > { %v821_v48 = vadd.f32 %v820_v46, %v819_v47 }
 0x56d   : > { %v822_v49 = vpack.c.bf16 %v821_v48, %v821_v48 }
 0x56f   : > { %824 = vst.msk [vmem:[#allocation2] sm:$0xf] %vm823_vm4, %v822_v49 }
 0x576   : > { %v837_v50 = vld [vmem:[#allocation2] sm:$0xf] }
 0x577   : > { %1253 = vmatmul.msk.bf16.vlgmr.msrb.gmra.mxu1 %vm581_vm1, %v837_v50  ;;  %v925_v13 = vunpack.c.l.bf16 %v837_v50 }
 0x5f4   : > { %v869_v58 = vpop.f32.mrf.mxu1 }
 0x5f5   : > { %v870_v59 = vadd.f32 %v869_v58, %v855_v57 }
 0x5f7   : > { %v873_v60 = vmul.f32 %v870_v59, %v870_v59 }
 0x5f9   : > { %v874_v61 = vmul.f32 %v873_v60, %v870_v59 }
 0x5fb   : > { %v875_v62 = vmul.f32 0.044715, %v874_v61 }
 0x5fc   : > { %v871_v63 = vpop.f32.mrf.mxu1 }
 0x5fd   : > { %v876_v0 = vadd.f32 %v875_v62, %v870_v59 }
 0x5ff   : > { %v877_v1 = vmul.f32 0.7978846, %v876_v0 }
 0x601   : > { %1437 = vtanh.f32 %v877_v1 }
 0x607   : > { %v1438_v2 = vpop.eup %1437 }
 0x608   : > { %v879_v6 = vadd.f32 1.0, %v1438_v2 }
 0x60a   : > { %v880_v7 = vmul.f32 0.5, %v879_v6 }
 0x60c   : > { %v881_v8 = vmul.f32 %v880_v7, %v870_v59 }
 0x60e   : > { %v882_v9 = vpack.c.bf16 %v881_v8, %v881_v8 }
 0x610   : > { %1270 = vmatmul.msk.bf16.vlgmr.msrb.gmra.mxu3 %vm908_vm5, %v882_v9 }
 0x693   : > { %v921_v11 = vpop.f32.mrf.mxu3 }
 0x694   : > { %v922_v12 = vadd.f32 %v921_v11, %v883_v10 }
 0x696   : > { %v926_v15 = vadd.f32 %v925_v13, %v922_v12 }
 0x698   : > { %v927_v16 = vsel %vm581_vm1, %v926_v15, 0.0 }
 0x699   : > { %928 = vadd.xlane.f32.xlu0 %v927_v16 }
 0x69b   : > { %v923_v17 = vpop.f32.mrf.mxu3 }
 0x70c   : > { %v929_v18 = vpop.xlane.xlu0 %928 }
 0x70d   : > { %v930_v19 = vmul.f32 %v929_v18, %v1921_v28 }
 0x70f   : > { %v931_v20 = vsub.f32 %v926_v15, %v930_v19 }
 0x711   : > { %v932_v21 = vmul.f32 %v931_v20, %v931_v20 }
 0x713   : > { %v933_v22 = vsel %vm581_vm1, %v932_v21, 0.0 }
 0x714   : > { %934 = vadd.xlane.f32.xlu1 %v933_v22 }
 0x787   : > { %v935_v23 = vpop.xlane.xlu1 %934 }
 0x788   : > { %v936_v24 = vmul.f32 %v935_v23, %v1921_v28 }
 0x78a   : > { %v937_v25 = vadd.f32 1e-12, %v936_v24 }
 0x78c   : > { %1439 = vrsqrt.f32 %v937_v25  ;;  %vm944_vm7 = vweird.f32 %v937_v25 }
 0x792   : > { %v1440_v26 = vpop.eup %1439 }
 0x793   : > { %v939_v27 = vmul.f32 %v1440_v26, %v937_v25  ;;  %vm945_vm6 = vweird.f32 %v1440_v26 }
 0x794   : > { %vm946_vm8 = vmor %vm944_vm7, %vm945_vm6 }
 0x795   : > { %v940_v3 = vmul.f32 %v1440_v26, %v939_v27 }
 0x797   : > { %v941_v29 = vmul.f32 0.5, %v940_v3 }
 0x799   : > { %v942_v30 = vsub.f32 1.5, %v941_v29 }
 0x79b   : > { %v943_v31 = vmul.f32 %v1440_v26, %v942_v30 }
 0x79d   : > { %v947_v33 = vsel %vm946_vm8, %v1440_v26, %v943_v31 }
 0x79e   : > { %v948_v35 = vmul.f32 %v947_v33, %v931_v20 }
 0x7a0   : > { %v950_v36 = vmul.f32 %v949_v32, %v948_v35 }
 0x7a2   : > { %v952_v37 = vadd.f32 %v951_v34, %v950_v36  ;;  %958 = sbr.rel (%p1271_p0) target bundleno = 2238 (0x8be), region = 80 }
 0x7a4   : > { %v953_v28 = vpack.c.bf16 %v952_v37, %v952_v37 }
 0x7a6   : > { %954 = vst.msk [vmem:[#allocation2] sm:$0xf] %vm823_vm4, %v953_v28 }
 0x7a7   : > { %v1307_v38 = vld [vmem:[%s2084_s15 + $0x8] sm:$0xff]  ;;  %v1306_v39 = vld [vmem:[%s2084_s15] sm:$0xff] }
 0x7a8   : > { %986 = vmatpush.bf16.msra.mxu0 %v1307_v38  ;;  %v1309_v40 = vld [vmem:[%s2085_s29 + $0x8] sm:$0xff]  ;;  %v1308_v41 = vld [vmem:[%s2085_s29] sm:$0xff] }
 0x7a9   : > { %1021 = vmatpush.bf16.msra.mxu1 %v1309_v40  ;;  %v964_v42 = vld [vmem:[%s2086_s9] sm:$0x1] }
 0x7aa   : > { %v999_v4 = vld [vmem:[%s2087_s5] sm:$0x1] }
 0x7ac   : > { %987 = vmatpush.bf16.msra.mxu0 %v1306_v39 }
 0x7ad   : > { %v959_v14 = vld [vmem:[#allocation2] sm:$0xf]  ;;  %1022 = vmatpush.bf16.msra.mxu1 %v1308_v41 }
 0x7af   : > { %1280 = vmatmul.msk.bf16.vlgmr.msra.gmra.mxu0 %vm581_vm1, %v959_v14 }
 0x82c   : > { %v989_v43 = vpop.f32.mrf.mxu0 }
 0x82d   : > { %v990_v5 = vadd.f32 %v989_v43, %v964_v42 }
 0x82f   : > { %1441 = vtanh.f32 %v990_v5 }
 0x834   : > { %v991_v44 = vpop.f32.mrf.mxu0 }
 0x835   : > { %v1442_v45 = vpop.eup %1441 }
 0x836   : > { %v994_v46 = vpack.c.bf16 %v1442_v45, %v1442_v45 }
 0x838   : > { %1289 = vmatmul.msk.bf16.vlgmr.msra.gmra.mxu1 %vm581_vm1, %v994_v46 }
 0x8b5   : > { %v1024_v47 = vpop.f32.mrf.mxu1 }
 0x8b6   : > { %v1025_v48 = vadd.f32 %v1024_v47, %v999_v4 }
 0x8b8   : > { %1028 = vst [vmem:[%s526_s1] sm:$0x1] %v1025_v48 }
 0x8bd   : > { %v1026_v49 = vpop.f32.mrf.mxu1 }
 0x8be PF: > { %s2088_s22 = sld [smem:[#allocation15_spill]]  ;;  %s1040_s26 = sshll.u32 %s526_s1, 4  ;;  %s1041_s26 = int_to_ptr.vmem [resolvable:$true] %s1040_s26 }
 0x8bf   : > { %s2089_s14 = sld [smem:[#allocation32_spill]]  ;;  %s1030_s17 = scalar_lea.sflag [#allocation6], %s1852_s20 }
 0x8c5   : > { %s1038_s24 = scalar_lea.hbm %s2089_s14, %s2088_s22  ;;  %s1523_s4 = scalar_lea.hbm %s2089_s14, 2 }
 0x8c6   : > { %s1042_s10 = sshll.u32 %s1038_s24, 4  ;;  %s1043_s10 = int_to_ptr.hbm [resolvable:$true] %s1042_s10 }
 0x8c7   : > { %s1517_s8 = sshra.s32 %s1043_s10, 4  ;;  %s1518_s8 = int_to_ptr.hbm [resolvable:$true] %s1517_s8 }
 0x8c8   : > { %s1519_s16 = scalar_lea.hbm %s1518_s8, 1  ;;  %p1524_p7 = scmp.lt.s32.totalorder %s1518_s8, %s2089_s14 }
 0x8c9   : > { %p1520_p2 = scmp.ne.s32.totalorder %s1518_s8, %s1519_s16  ;;  %p1525_p11 = scmp.lt.s32.totalorder %s1523_s4, %s1519_s16 }
 0x8cb   : > { %p1521_p5 = pnand %p1520_p2, %p1779_p8  ;;  %p1526_p12 = por %p1525_p11, %p1524_p7 }
 0x8cd   : > { %p1522_p4 = pneg %p1521_p5 }
 0x8cf   : > { %p1527_p13 = pnand %p1526_p12, %p1522_p4 }
 0x8d1   : > { %1530 = shalt.err (!%p1527_p13)
}
 0x8d2   : > { %1314 = dma.vmem_to_hbm [thread:$0]  (%p1779_p8), %s1041_s26, 16, %s1043_s10, %s1030_s17  }
 0x8d3 PF: > { %s2091_s1 = sld [smem:[#allocation13_spill]]  ;;  %p1328_p1 = scmp.ge.s32.totalorder %s1629_s27, 2 }
 0x8d5   : > { %p1324_p3 = pnand %p1328_p1, %p1783_p9 }
 0x8d7   : > { %p1325_p10 = pneg %p1324_p3 }
 0x8d9   : > { %s1054_s9 = sand.u32 1, %s2091_s1  }
 0x8da   : > { %s1055_s11 = scalar_lea.sflag [#allocation6], %s1054_s9 }
 0x8db   : > { %1584 = dma.done.wait (%p1325_p10), %s1055_s11, 16  }
 0x8dc   : > { %1586 = vsyncadd (%p1325_p10), %s1055_s11, 4294967280  ;;  %s30_s27 = sadd.s32 1, %s1629_s27   ;;  %s2093_s13 = sld [smem:[#allocation14_spill]] }
 0x8dd   : > { %p27_p6 = scmp.ge.s32.totalorder %s30_s27, 6   ;;  %s2094_s22 = sld [smem:[#allocation22_spill]] }
 0x8de   : > { %s2095_s23 = sld [smem:[#allocation16_spill]]  ;;  %s2099_s17 = smov %s1593_s18 }
 0x8df   : > { %s2096_s24 = sld [smem:[#allocation17_spill]]  ;;  %s2100_s18 = smov %s1597_s19 }
 0x8e0   : > { %s2097_s25 = sld [smem:[#allocation20_spill]]  ;;  %s2101_s19 = smov %s1832_s28 }
 0x8e1   : > { %s2098_s26 = sld [smem:[#allocation21_spill]]  ;;  %s2102_s20 = smov %s1605_s21 }
 0x8e2   : > { %s2103_s21 = smov %s2093_s13  ;;  %29 = sbr.rel (!%p27_p6) target bundleno = 22 (0x16), region = 145 }
 0x8e7   :  { %1060 = vsyncpa [#allocation5], 1 }
 0x8e8   :  { %1062 = vsyncpa [#allocation5 + $0x1], 1 }
 0x8e9   :  { %1063 = vsyncpa [#allocation8], 1 }
 0x8ea   :  { %1065 = vsyncpa [#allocation8 + $0x1], 1 }
 0x8eb   :  { %1066 = vsyncpa [#allocation6], 1 }
 0x8ec   :  { %1068 = vsyncpa [#allocation6 + $0x1], 1 }

</bundles_post_ra>
